<compile_context>
chip_gen: v5e
topology: v5e:2x2
jax: 0.10.0
libtpu: 0.0.40
codegen_flags: <defaults>
</compile_context>

<pallas_src>
import functools
import math

import jax
import jax.numpy as jnp
from jax.experimental import pallas as pl
from jax.experimental.pallas import tpu as pltpu


def _star_relu_kernel(s_ref, b_ref, x_ref, o_ref):
    # s_ref, b_ref: (1,) float32 scalars in SMEM.  x_ref/o_ref: (tm, L) VMEM tiles.
    s = s_ref[0]
    b = b_ref[0]
    x = x_ref[...].astype(jnp.float32)
    r = jnp.maximum(x, 0.0)                      # ReLU
    o_ref[...] = (s * (r * r) + b).astype(o_ref.dtype)


def _cdiv(a, b):
    return -(-a // b)


@functools.lru_cache(maxsize=1)
def _tpu_hw_info():
    """Best-effort (vmem_bytes_per_core, num_tensorcores_per_chip)."""
    vmem_bytes = 64 << 20          # conservative default (v7x: 64 MiB / TC)
    num_tc = 1
    try:
        dev = jax.devices()[0]
        kind = (getattr(dev, "device_kind", "") or "").lower()
        if "v7" in kind:
            vmem_bytes, num_tc = 64 << 20, 2
        elif "v4" in kind or "v5p" in kind:
            vmem_bytes, num_tc = 128 << 20, 2          # megacore
        elif "v5" in kind or "v6" in kind:
            vmem_bytes, num_tc = 128 << 20, 1
    except Exception:
        pass
    try:
        info = pltpu.get_tpu_info()
        vb = getattr(info, "vmem_capacity_bytes", None)
        if vb:
            vmem_bytes = int(vb)
    except Exception:
        pass
    return vmem_bytes, num_tc


def _pick_lane_dense_layout(n):
    """Lane-dense (rows, lanes) view of a flat tensor; n must be a multiple of 128."""
    for lanes in (4096, 2048, 1024, 512, 256, 128):
        if n % lanes == 0:
            return n // lanes, lanes
    raise ValueError("n must be a multiple of 128")


def _choose_row_tile(M, L, itemsize, max_tile_bytes, num_tc):
    sublane = max(1, 32 // max(itemsize, 1))     # 8 f32 / 16 bf16 / 32 int8
    tm = max(1, max_tile_bytes // (L * itemsize))
    tm = min(tm, M)                              # no hard row cap (perf review)
    if tm < M:
        tm = max(sublane, (tm // sublane) * sublane)
    elif num_tc >= 2 and M >= 2 * sublane:
        # Multi-TC chips only: split a single-block tensor so the parallel grid
        # axis can shard across TensorCores.
        half = ((M // 2) // sublane) * sublane
        if half >= sublane:
            tm = half
    return tm


def _star_relu_jnp(x, s1, b1):
    xf = x.astype(jnp.float32)
    r = jnp.maximum(xf, 0.0)
    return (s1[0] * (r * r) + b1[0]).astype(x.dtype)


def _star_relu_bulk(x_flat, s1, b1):
    """Lane-dense Pallas path; x_flat length is a multiple of 128."""
    n = x_flat.shape[0]
    M, L = _pick_lane_dense_layout(n)
    x2 = x_flat.reshape(M, L)                    # metadata-only reshape

    itemsize = jnp.dtype(x_flat.dtype).itemsize
    vmem_bytes, num_tc = _tpu_hw_info()
    # ~16 MiB tiles on 128 MiB-VMEM chips (v5e/v6e), ~8 MiB on v7x (64 MiB/TC).
    max_tile_bytes = max(4 << 20, min(16 << 20, vmem_bytes // 8))

    tm = _choose_row_tile(M, L, itemsize, max_tile_bytes, num_tc)
    num_blocks = _cdiv(M, tm)                    # ragged last block handled by Pallas

    # v7x load balance: keep small block counts even across the two TCs.
    if num_tc >= 2 and 1 < num_blocks < 8 and num_blocks % 2 == 1:
        sublane = max(1, 32 // max(itemsize, 1))
        tm_new = _cdiv(M, num_blocks + 1)
        tm_new = max(sublane, _cdiv(tm_new, sublane) * sublane)
        tm = min(tm_new, M)
        num_blocks = _cdiv(M, tm)

    tile_bytes = tm * L * itemsize
    # double-buffered in + out tiles + headroom, capped at 3/4 of physical VMEM
    vmem_limit = int(min(max(4 * tile_bytes + (4 << 20), 32 << 20),
                         (vmem_bytes * 3) // 4))

    out = pl.pallas_call(
        _star_relu_kernel,
        out_shape=jax.ShapeDtypeStruct((M, L), x_flat.dtype),
        grid=(num_blocks,),
        in_specs=[
            pl.BlockSpec(memory_space=pltpu.MemorySpace.SMEM),   # scale (1,)
            pl.BlockSpec(memory_space=pltpu.MemorySpace.SMEM),   # bias  (1,)
            pl.BlockSpec((tm, L), lambda i: (i, 0)),             # x row tile
        ],
        out_specs=pl.BlockSpec((tm, L), lambda i: (i, 0)),
        compiler_params=pltpu.CompilerParams(
            dimension_semantics=("parallel",),
            vmem_limit_bytes=vmem_limit,
        ),
    )(s1, b1, x2)
    return out.reshape(-1)


def star_relu_forward(x, scale, bias):
    """y = scale * relu(x)**2 + bias, with scalar scale / bias of shape (1,)."""
    orig_shape = x.shape
    n = int(math.prod(orig_shape)) if orig_shape else 1
    s1 = jnp.asarray(scale).reshape(1).astype(jnp.float32)
    b1 = jnp.asarray(bias).reshape(1).astype(jnp.float32)

    if n == 0:
        return x

    x_flat = x.reshape(-1)
    n_bulk = (n // 128) * 128                    # lane-dense bulk portion

    if n_bulk == 0:
        # Tiny tensor (<128 elements): kernel launch not worth it.
        return _star_relu_jnp(x_flat, s1, b1).reshape(orig_shape)

    if n_bulk == n:
        return _star_relu_bulk(x_flat, s1, b1).reshape(orig_shape)

    # Bulk + tail split: full-width stores for the bulk, <128-element tail in jnp.
    y_bulk = _star_relu_bulk(x_flat[:n_bulk], s1, b1)
    y_tail = _star_relu_jnp(x_flat[n_bulk:], s1, b1)
    return jnp.concatenate([y_bulk, y_tail]).reshape(orig_shape)


class StarReLU:
    """JAX mirror of the PyTorch StarReLU module (forward pass only)."""

    def __init__(self, scale_value=1.0, bias_value=0.0, scale_learnable=True,
                 bias_learnable=True, mode=None, inplace=False):
        # `inplace` / learnable flags only affect training in PyTorch; forward is identical.
        self.scale = scale_value * jnp.ones((1,), dtype=jnp.float32)
        self.bias = bias_value * jnp.ones((1,), dtype=jnp.float32)

    def __call__(self, x):
        return star_relu_forward(x, self.scale, self.bias)


if __name__ == "__main__":
    key = jax.random.PRNGKey(0)
    batch, seq, hidden = 2, 8, 32
    x = jax.random.normal(key, (batch, seq, hidden), dtype=jnp.float32)

    mod = StarReLU(scale_value=1.25, bias_value=-0.5)

    def ref_fn(v):
        return mod.scale * jnp.maximum(v, 0.0) ** 2 + mod.bias

    y = mod(x)
    jax.block_until_ready(y)
    assert y.shape == x.shape
    assert jnp.allclose(y, ref_fn(x), atol=1e-6, rtol=1e-6)

    # Lane-dense repack where n is divisible by 128 only (99 x 128 view).
    x2 = jax.random.normal(jax.random.PRNGKey(1), (4, 33, 96), dtype=jnp.float32)
    y2 = mod(x2)
    jax.block_until_ready(y2)
    assert jnp.allclose(y2, ref_fn(x2), atol=1e-6, rtol=1e-6)

    # Bulk + tail split: n = 231 -> 128-element Pallas bulk + 103-element jnp tail.
    x3 = jax.random.normal(jax.random.PRNGKey(2), (3, 7, 11), dtype=jnp.float32)
    y3 = mod(x3)
    jax.block_until_ready(y3)
    assert jnp.allclose(y3, ref_fn(x3), atol=1e-6, rtol=1e-6)

    # Tiny tensor (<128 elements): pure-jnp path.
    x4 = jax.random.normal(jax.random.PRNGKey(3), (2, 5, 7), dtype=jnp.float32)
    y4 = mod(x4)
    jax.block_until_ready(y4)
    assert jnp.allclose(y4, ref_fn(x4), atol=1e-6, rtol=1e-6)

    print("KERNEL_OK")
</pallas_src>

<mosaic_0001>
module attributes {stable_mosaic.version = 11 : i64} {
  func.func @_star_relu_kernel(%arg0: i32, %arg1: memref<1xf32, #tpu.memory_space<smem>>, %arg2: memref<1xf32, #tpu.memory_space<smem>>, %arg3: memref<1x512xf32, #tpu.memory_space<vmem>>, %arg4: memref<1x512xf32, #tpu.memory_space<vmem>>) attributes {dimension_semantics = [#tpu.dimension_semantics<parallel>], iteration_bounds = array<i64: 1>, scalar_prefetch = 0 : i64, scratch_operands = 0 : i64, tpu.core_type = #tpu.core_type<tc>, window_params = [{transform_indices = @transform_0, window_bounds = array<i64: 1>}, {transform_indices = @transform_1, window_bounds = array<i64: 1>}, {transform_indices = @transform_2, window_bounds = array<i64: 1, 512>}, {transform_indices = @transform_3, window_bounds = array<i64: 1, 512>}]} {
    %c0 = arith.constant 0 : index
    %0 = memref.load %arg1[%c0] : memref<1xf32, #tpu.memory_space<smem>>
    %c0_0 = arith.constant 0 : index
    %1 = memref.load %arg2[%c0_0] : memref<1xf32, #tpu.memory_space<smem>>
    %c0_1 = arith.constant 0 : index
    %c0_2 = arith.constant 0 : index
    %2 = vector.load %arg3[%c0_1, %c0_2] : memref<1x512xf32, #tpu.memory_space<vmem>>, vector<1x512xf32>
    %cst = arith.constant 0.000000e+00 : f32
    %3 = vector.broadcast %cst : f32 to vector<1x512xf32>
    %4 = arith.maximumf %2, %3 : vector<1x512xf32>
    %5 = arith.mulf %4, %4 : vector<1x512xf32>
    %6 = vector.broadcast %0 : f32 to vector<1x512xf32>
    %7 = arith.mulf %6, %5 : vector<1x512xf32>
    %8 = vector.broadcast %1 : f32 to vector<1x512xf32>
    %9 = arith.addf %7, %8 : vector<1x512xf32>
    %c0_3 = arith.constant 0 : index
    %c0_4 = arith.constant 0 : index
    %10 = vector.load %arg4[%c0_3, %c0_4] : memref<1x512xf32, #tpu.memory_space<vmem>>, vector<1x512xf32>
    tpu.vector_store %arg4[%c0_3, %c0_4], %9 {strides = array<i32>} : memref<1x512xf32, #tpu.memory_space<vmem>>, vector<1x512xf32>,
    return
  }
  func.func @transform_0(%arg0: i32) -> i32 {
    %c0_i32 = arith.constant 0 : i32
    %c0_i32_0 = arith.constant 0 : i32
    return %c0_i32 : i32
  }
  func.func @transform_1(%arg0: i32) -> i32 {
    %c0_i32 = arith.constant 0 : i32
    %c0_i32_0 = arith.constant 0 : i32
    return %c0_i32 : i32
  }
  func.func @transform_2(%arg0: i32) -> (i32, i32) {
    %c0_i32 = arith.constant 0 : i32
    %c0_i32_0 = arith.constant 0 : i32
    return %arg0, %c0_i32 : i32, i32
  }
  func.func @transform_3(%arg0: i32) -> (i32, i32) {
    %c0_i32 = arith.constant 0 : i32
    %c0_i32_0 = arith.constant 0 : i32
    return %arg0, %c0_i32 : i32, i32
  }
}

</mosaic_0001>

<bundles_post_ra>
// kernel: tpu_custom_call.1
= control target key start
LH: loop header
LB: loop body
LE: loop exit
PB: predicated region body
PF: predicated region fallthrough
CT: control target
= control target key end

     0   :  { %s107_s0 = inlined_call_operand.<no memory space> [shape: f32[1], index: 0, kind: input, shape index: {}]   ;;  %s108_s1 = inlined_call_operand.<no memory space> [shape: f32[1], index: 1, kind: input, shape index: {}]   ;;  %s109_s2 = inlined_call_operand.vmem [shape: f32[1,512], index: 2, kind: input, shape index: {}]   ;;  %s110_s3 = inlined_call_operand.hbm [shape: f32[1,512], index: 3, kind: output, shape index: {}]  }
   0x1   :  { %v19_v0 = vld [vmem:[%s109_s2] sm:$0xf] }
   0x2   :  { %10 = vsyncpa [#allocation5], 0  ;;  %v20_v1 = vmax.f32 %v19_v0, 0.0  ;;  %v22_v2 = vstv %s107_s0  ;;  %v26_v3 = vlaneseq  ;;  %v24_v5 = vstv %s108_s1  ;;  %s74_s18 = smov [#allocation4]   ;;  %s38_s22 = sshll.u32 %s110_s3, 4  ;;  %s39_s22 = int_to_ptr.hbm [resolvable:$true] %s38_s22 }
   0x3   :  { %s36_s19 = sshll.u32 %s74_s18, 4  ;;  %s37_s19 = int_to_ptr.vmem [resolvable:$true] %s36_s19 }
   0x4   :  { %v21_v4 = vmul.f32 %v20_v1, %v20_v1  ;;  %vm28_vm0 = vcmp.lt.s32.totalorder %v26_v3, 512 }
   0x6   :  { %v23_v6 = vmul.f32 %v22_v2, %v21_v4 }
   0x8   :  { %v25_v7 = vadd.f32 %v24_v5, %v23_v6 }
   0xa   :  { %30 = vst.msk [vmem:[#allocation4] sm:$0xf] %vm28_vm0, %v25_v7 }
   0xb   :  { %41 = dma.vmem_to_hbm [thread:$0]  %s37_s19, 64, %s39_s22, [#allocation5]  }
   0xc   :  { %72 = dma.done.wait [#allocation5], 64  }
   0xd   :  { %73 = vsyncadd [#allocation5], 4294967232 }
   0xe   :  { %46 = vsyncpa [#allocation5], 1 }

</bundles_post_ra>
